<compile_context>
chip_gen: v5e
topology: v5e:2x2
jax: 0.10.0
libtpu: 0.0.40
codegen_flags: <defaults>
</compile_context>

<pallas_src>
import jax
import jax.numpy as jnp
from jax.experimental import pallas as pl
from jax.experimental.pallas import tpu as pltpu

_LANES = 128
_SUBLANES = 8


def _fusion_kernel(fl_ref, fc_ref, wl_ref, wc_ref, b_ref, out_ref):
    """W = F_L @ Wl + F_C @ Wc + b; sig = sigmoid(W); out = sig*F_L + (1-sig)*F_C."""
    fl = fl_ref[...]                               # (tm, D_eff), input dtype
    fc = fc_ref[...]                               # (tm, D_eff), input dtype
    # Equivalent to cat([F_L, F_C], -1) @ weight.T + bias; the bias is folded
    # into the first accumulation to save one vector add per tile.
    w = jnp.dot(fc, wc_ref[...], preferred_element_type=jnp.float32) + b_ref[...]
    w = w + jnp.dot(fl, wl_ref[...], preferred_element_type=jnp.float32)
    # sigmoid runs on the EUP in f32; the blend runs in the input dtype
    # (bf16 VALU on v6e/v7x; a no-op for f32 inputs).
    # TODO(synk): on v5e with bf16 inputs an f32 blend would be preferable.
    sig = jax.nn.sigmoid(w).astype(fl.dtype)
    out_ref[...] = (sig * fl + (1.0 - sig) * fc).astype(out_ref.dtype)


def _pack_factor(d):
    """How many feature rows fit in one 128-lane vreg row."""
    if d < _LANES and _LANES % d == 0:
        return _LANES // d
    return 1


def prepare_fusion_params(weight, bias, *, dtype=None):
    """One-time preprocessing of nn.Linear params: transpose, split, lane-pack."""
    d = weight.shape[0]
    assert weight.shape == (d, 2 * d), "expected nn.Linear(2*D -> D) weight (D, 2D)"
    assert bias.shape == (d,)
    p = _pack_factor(d)
    wt = weight.T                                  # (2D, D)
    wl, wc = wt[:d, :], wt[d:, :]                  # (D, D) each
    if p > 1:
        eye = jnp.eye(p, dtype=wl.dtype)
        wl = jnp.kron(eye, wl)                     # (P*D, P*D) block-diagonal
        wc = jnp.kron(eye, wc)
        b = jnp.tile(bias, p)                      # (P*D,)
    else:
        b = bias
    if dtype is not None:
        wl = wl.astype(dtype)
        wc = wc.astype(dtype)
    b = b.astype(jnp.float32).reshape(1, p * d)    # added to the f32 accumulator
    return wl, wc, b, p


def _choose_tile(m_packed, d_eff, itemsize):
    """Pick the packed-row tile: big for DMA efficiency, capped for VMEM & v7x."""
    target = 1024                      # ~512 KiB / input tile at 128 lanes, f32
    min_steps = 8                      # keep the grid deep enough for v7x's 2 TCs
    vmem_budget = 24 * 1024 * 1024     # headroom under the 32 MiB scoped default
    resident = 2 * (2 * d_eff * d_eff * 4 + d_eff * 4)    # weights + bias
    per_row = 2 * 3 * d_eff * itemsize                    # F_L, F_C, out (dbl-buf)
    cap = max(_SUBLANES, (vmem_budget - resident) // per_row)
    cap = max(_SUBLANES, (cap // _SUBLANES) * _SUBLANES)
    tm = min(target, cap)
    if m_packed <= tm:
        return m_packed                # single grid step, block == full extent
    tm = min(tm, max(_SUBLANES,
                     (m_packed // min_steps // _SUBLANES) * _SUBLANES))
    return max(_SUBLANES, tm)


def adaptive_fusion_packed(F_L, F_C, params):
    """Run the fused kernel given preprocessed (wl, wc, bias, pack_factor)."""
    wl, wc, b, p = params
    orig_shape = F_L.shape
    d = orig_shape[-1]
    d_eff = p * d

    fl2 = F_L.reshape(-1, d)
    fc2 = F_C.reshape(-1, d)
    m = fl2.shape[0]

    m_packed = pl.cdiv(m, p)
    tm = _choose_tile(m_packed, d_eff, fl2.dtype.itemsize)
    grid_m = pl.cdiv(m_packed, tm)
    m_pad = grid_m * tm * p

    if m_pad != m:
        pad = ((0, m_pad - m), (0, 0))
        fl2 = jnp.pad(fl2, pad)
        fc2 = jnp.pad(fc2, pad)

    # Free (row-major contiguous) lane-packing reshape: (M, D) -> (M/P, P*D).
    fl_p = fl2.reshape(grid_m * tm, d_eff)
    fc_p = fc2.reshape(grid_m * tm, d_eff)

    out = pl.pallas_call(
        _fusion_kernel,
        out_shape=jax.ShapeDtypeStruct((grid_m * tm, d_eff), F_L.dtype),
        grid_spec=pltpu.PrefetchScalarGridSpec(
            num_scalar_prefetch=0,
            grid=(grid_m,),
            in_specs=[
                pl.BlockSpec((tm, d_eff), lambda i: (i, 0)),       # F_L tile
                pl.BlockSpec((tm, d_eff), lambda i: (i, 0)),       # F_C tile
                pl.BlockSpec((d_eff, d_eff), lambda i: (0, 0)),    # Wl (resident)
                pl.BlockSpec((d_eff, d_eff), lambda i: (0, 0)),    # Wc (resident)
                pl.BlockSpec((1, d_eff), lambda i: (0, 0)),        # bias (resident)
            ],
            out_specs=pl.BlockSpec((tm, d_eff), lambda i: (i, 0)),
        ),
        compiler_params=pltpu.CompilerParams(
            dimension_semantics=("parallel",)),
    )(fl_p, fc_p, wl, wc, b)

    out = out.reshape(m_pad, d)[:m]
    return out.reshape(orig_shape)


def adaptive_fusion(F_L, F_C, weight, bias):
    """F_L, F_C: (..., D); weight: (D, 2D) as in nn.Linear(2D -> D); bias: (D,)."""
    assert F_L.shape == F_C.shape and F_L.dtype == F_C.dtype
    params = prepare_fusion_params(weight, bias, dtype=F_L.dtype)
    return adaptive_fusion_packed(F_L, F_C, params)


def adaptive_fusion_ref(F_L, F_C, weight, bias):
    """Pure-JAX reference mirroring the PyTorch forward."""
    F_concat = jnp.concatenate([F_L, F_C], axis=-1)
    W = F_concat @ weight.T + bias
    sig = jax.nn.sigmoid(W)
    return sig * F_L + (1.0 - sig) * F_C


if __name__ == "__main__":
    # Small shapes implied by the forward: F_L, F_C: (B, N, D) with
    # in_channels = D = 32, out_channels = 2*D = 64.
    B, N, D = 2, 16, 32
    key = jax.random.PRNGKey(0)
    k1, k2, k3, k4 = jax.random.split(key, 4)

    F_L = jax.random.normal(k1, (B, N, D), dtype=jnp.float32)
    F_C = jax.random.normal(k2, (B, N, D), dtype=jnp.float32)

    # Deterministic nn.Linear-style init: U(-1/sqrt(fan_in), 1/sqrt(fan_in)), fan_in = 2*D.
    bound = 1.0 / jnp.sqrt(jnp.float32(2 * D))
    weight = jax.random.uniform(k3, (D, 2 * D), minval=-bound, maxval=bound,
                                dtype=jnp.float32)
    bias = jax.random.uniform(k4, (D,), minval=-bound, maxval=bound,
                              dtype=jnp.float32)

    # jit so the one-time weight preprocessing is folded by XLA outside the kernel.
    fused = jax.jit(adaptive_fusion)
    out = jax.block_until_ready(fused(F_L, F_C, weight, bias))

    ref = adaptive_fusion_ref(F_L, F_C, weight, bias)
    assert out.shape == (B, N, D)
    assert jnp.allclose(out, ref, atol=1e-5, rtol=1e-5), "mismatch vs reference"

    print("KERNEL_OK")
</pallas_src>

<mosaic_0001>
module attributes {stable_mosaic.version = 11 : i64} {
  func.func @_fusion_kernel(%arg0: i32, %arg1: memref<8x128xf32, #tpu.memory_space<vmem>>, %arg2: memref<8x128xf32, #tpu.memory_space<vmem>>, %arg3: memref<128x128xf32, #tpu.memory_space<vmem>>, %arg4: memref<128x128xf32, #tpu.memory_space<vmem>>, %arg5: memref<1x128xf32, #tpu.memory_space<vmem>>, %arg6: memref<8x128xf32, #tpu.memory_space<vmem>>) attributes {dimension_semantics = [#tpu.dimension_semantics<parallel>], iteration_bounds = array<i64: 1>, scalar_prefetch = 0 : i64, scratch_operands = 0 : i64, tpu.core_type = #tpu.core_type<tc>, window_params = [{transform_indices = @transform_0, window_bounds = array<i64: 8, 128>}, {transform_indices = @transform_1, window_bounds = array<i64: 8, 128>}, {pipeline_mode = #tpu.pipeline_mode<synchronous>, transform_indices = @transform_2, window_bounds = array<i64: 128, 128>}, {pipeline_mode = #tpu.pipeline_mode<synchronous>, transform_indices = @transform_3, window_bounds = array<i64: 128, 128>}, {pipeline_mode = #tpu.pipeline_mode<synchronous>, transform_indices = @transform_4, window_bounds = array<i64: 1, 128>}, {transform_indices = @transform_5, window_bounds = array<i64: 8, 128>}]} {
    %c0 = arith.constant 0 : index
    %c0_0 = arith.constant 0 : index
    %0 = vector.load %arg1[%c0, %c0_0] : memref<8x128xf32, #tpu.memory_space<vmem>>, vector<8x128xf32>
    %c0_1 = arith.constant 0 : index
    %c0_2 = arith.constant 0 : index
    %1 = vector.load %arg2[%c0_1, %c0_2] : memref<8x128xf32, #tpu.memory_space<vmem>>, vector<8x128xf32>
    %c0_3 = arith.constant 0 : index
    %c0_4 = arith.constant 0 : index
    %2 = vector.load %arg4[%c0_3, %c0_4] : memref<128x128xf32, #tpu.memory_space<vmem>>, vector<128x128xf32>
    %cst = arith.constant dense<0.000000e+00> : vector<8x128xf32>
    %3 = tpu.matmul %1, %2, %cst {dimension_numbers = #tpu.dot_dimension_numbers<[1], [0], [0], [1], [0, 0, 1, 1], [], []>} : vector<8x128xf32>, vector<128x128xf32>, vector<8x128xf32> -> vector<8x128xf32>
    %c0_5 = arith.constant 0 : index
    %c0_6 = arith.constant 0 : index
    %4 = vector.load %arg5[%c0_5, %c0_6] : memref<1x128xf32, #tpu.memory_space<vmem>>, vector<1x128xf32>
    %5 = vector.broadcast %4 : vector<1x128xf32> to vector<8x128xf32>
    %6 = arith.addf %3, %5 : vector<8x128xf32>
    %c0_7 = arith.constant 0 : index
    %c0_8 = arith.constant 0 : index
    %7 = vector.load %arg3[%c0_7, %c0_8] : memref<128x128xf32, #tpu.memory_space<vmem>>, vector<128x128xf32>
    %cst_9 = arith.constant dense<0.000000e+00> : vector<8x128xf32>
    %8 = tpu.matmul %0, %7, %cst_9 {dimension_numbers = #tpu.dot_dimension_numbers<[1], [0], [0], [1], [0, 0, 1, 1], [], []>} : vector<8x128xf32>, vector<128x128xf32>, vector<8x128xf32> -> vector<8x128xf32>
    %9 = arith.addf %6, %8 : vector<8x128xf32>
    %10 = arith.negf %9 : vector<8x128xf32>
    %11 = math.exp %10 : vector<8x128xf32>
    %cst_10 = arith.constant 1.000000e+00 : f32
    %12 = vector.broadcast %cst_10 : f32 to vector<8x128xf32>
    %13 = arith.addf %12, %11 : vector<8x128xf32>
    %14 = arith.divf %12, %13 : vector<8x128xf32>
    %15 = arith.mulf %14, %0 : vector<8x128xf32>
    %cst_11 = arith.constant 1.000000e+00 : f32
    %16 = vector.broadcast %cst_11 : f32 to vector<8x128xf32>
    %17 = arith.subf %16, %14 : vector<8x128xf32>
    %18 = arith.mulf %17, %1 : vector<8x128xf32>
    %19 = arith.addf %15, %18 : vector<8x128xf32>
    %c0_12 = arith.constant 0 : index
    %c0_13 = arith.constant 0 : index
    %20 = vector.load %arg6[%c0_12, %c0_13] : memref<8x128xf32, #tpu.memory_space<vmem>>, vector<8x128xf32>
    tpu.vector_store %arg6[%c0_12, %c0_13], %19 {strides = array<i32>} : memref<8x128xf32, #tpu.memory_space<vmem>>, vector<8x128xf32>,
    return
  }
  func.func @transform_0(%arg0: i32) -> (i32, i32) {
    %c0_i32 = arith.constant 0 : i32
    %c0_i32_0 = arith.constant 0 : i32
    return %arg0, %c0_i32 : i32, i32
  }
  func.func @transform_1(%arg0: i32) -> (i32, i32) {
    %c0_i32 = arith.constant 0 : i32
    %c0_i32_0 = arith.constant 0 : i32
    return %arg0, %c0_i32 : i32, i32
  }
  func.func @transform_2(%arg0: i32) -> (i32, i32) {
    %c0_i32 = arith.constant 0 : i32
    %c0_i32_0 = arith.constant 0 : i32
    %c0_i32_1 = arith.constant 0 : i32
    return %c0_i32, %c0_i32_0 : i32, i32
  }
  func.func @transform_3(%arg0: i32) -> (i32, i32) {
    %c0_i32 = arith.constant 0 : i32
    %c0_i32_0 = arith.constant 0 : i32
    %c0_i32_1 = arith.constant 0 : i32
    return %c0_i32, %c0_i32_0 : i32, i32
  }
  func.func @transform_4(%arg0: i32) -> (i32, i32) {
    %c0_i32 = arith.constant 0 : i32
    %c0_i32_0 = arith.constant 0 : i32
    %c0_i32_1 = arith.constant 0 : i32
    return %c0_i32, %c0_i32_0 : i32, i32
  }
  func.func @transform_5(%arg0: i32) -> (i32, i32) {
    %c0_i32 = arith.constant 0 : i32
    %c0_i32_0 = arith.constant 0 : i32
    return %arg0, %c0_i32 : i32, i32
  }
}

</mosaic_0001>

<bundles_post_ra>
// kernel: tile.8
= control target key start
LH: loop header
LB: loop body
LE: loop exit
PB: predicated region body
PF: predicated region fallthrough
CT: control target
= control target key end

     0   :  { %s22_s0 = inlined_call_operand.vmem [shape: f32[32], index: 0, kind: input, shape index: {}]   ;;  %s23_s1 = inlined_call_operand.vmem [shape: f32[4,32], index: 1, kind: output, shape index: {}]  }
   0x1   :  { %v4_v0 = vld [vmem:[%s22_s0] ss:$0 sm:$0xff] }
   0x2   :  { %5 = vst [vmem:[%s23_s1] sm:$0xf] %v4_v0 }

// kernel: tile.9
= control target key start
LH: loop header
LB: loop body
LE: loop exit
PB: predicated region body
PF: predicated region fallthrough
CT: control target
= control target key end

     0   :  { %s37_s8 = smov 32   ;;  %s38_s9 = smov 64   ;;  %vm7_vm0 = vcmask 261120   ;;  %vm13_vm1 = vcmask 1048320   ;;  %vm19_vm2 = vcmask 785920   ;;  %vm25_vm3 = vcmask 523520   ;;  %s55_s0 = inlined_call_operand.vmem [shape: f32[4,32], index: 0, kind: input, shape index: {}]   ;;  %s56_s1 = inlined_call_operand.vmem [shape: f32[1,128], index: 1, kind: output, shape index: {}]  }
   0x1   :  { %v4_v0 = vld [vmem:[%s55_s0] sm:$0xf]  ;;  %s36_s0 = smov 96  }
   0x2   :  { %5 = vst [vmem:[#allocation1] sm:$0xf] %v4_v0 }
   0x9   :  { %v10_v1 = vld [vmem:[#allocation1 + $0x3] sm:$0x1]   ;;  %v22_v2 = vld [vmem:[#allocation1 + $0x1] sm:$0x1]   ;;  %v16_v3 = vld [vmem:[#allocation1 + $0x2] sm:$0x1]  }
   0xa   :  { %11 = vrot.lane.b32.xlu0 %v10_v1, %s36_s0  ;;  %23 = vrot.lane.b32.xlu1 %v22_v2, %s37_s8  ;;  %v6_v4 = vld [vmem:[#allocation1] sm:$0x1]  }
   0xb   :  { %8 = vst.msk [vmem:[#allocation0] sm:$0x1] %vm7_vm0, %v6_v4  }
  0x12   :  { %17 = vrot.lane.b32.xlu0 %v16_v3, %s38_s9 }
  0x7c   :  { %v12_v5 = vpop.permute.xlu0 %11   ;;  %v24_v6 = vpop.permute.xlu1 %23  }
  0x7d   :  { %14 = vst.msk [vmem:[#allocation0] sm:$0x1] %vm13_vm1, %v12_v5  }
  0x84   :  { %v18_v7 = vpop.permute.xlu0 %17  }
  0x85   :  { %20 = vst.msk [vmem:[#allocation0] sm:$0x1] %vm19_vm2, %v18_v7  }
  0x86   :  { %26 = vst.msk [vmem:[#allocation0] sm:$0x1] %vm25_vm3, %v24_v6  }
  0x8d   :  { %v29_v8 = vld [vmem:[#allocation0] sm:$0x1] }
  0x8e   :  { %32 = vst [vmem:[%s56_s1] sm:$0x1] %v29_v8 }

</bundles_post_ra>
